<compile_context>
chip_gen: v6e
topology: v6e:2x2x1
jax: 0.10.0
libtpu: 0.0.40
codegen_flags: <defaults>
</compile_context>

<pallas_src>
import jax
import jax.numpy as jnp
from jax import lax
from jax.experimental import pallas as pl
from jax.experimental.pallas import tpu as pltpu

LANE = 128
SUBLANE = 8
SUBLANE_ALIGN = 16          # covers f32 (8-row) and bf16 (16-row) sublane packing
MAX_BLOCK_BYTES = 8 << 20   # ~8 MiB per input block (review target 4-8 MiB)


def _round_up(x, m):
    return (x + m - 1) // m * m


def _block_bytes_target():
    """Per-input block size in bytes, derived from this generation's VMEM."""
    try:
        vmem = int(pltpu.get_tpu_info().vmem_capacity_bytes)
    except Exception:
        vmem = 64 << 20                       # conservative: v7x per-TC VMEM
    budget = (vmem * 3) // 4                  # headroom for compiler scratch
    return max(1 << 20, min(MAX_BLOCK_BYTES, budget // 4))  # 2 inputs x 2 bufs


def _make_kernel(block_rows, blocks_per_chunk, total_rows, need_mask):
    """relu -> squared-diff -> single-vreg accumulate kernel (static config)."""
    n_vregs = block_rows // SUBLANE

    def kernel(x_ref, y_ref, out_ref, acc_ref):
        c = pl.program_id(0)   # chunk (parallel across TensorCores on v7x)
        i = pl.program_id(1)   # reduction step within the chunk

        @pl.when(i == 0)
        def _():
            acc_ref[...] = jnp.zeros_like(acc_ref)

        # ReLU in the input dtype (exact for bf16; packed vregs halve VPU cost
        # on v6e/v7x), then upcast for subtract/square/accumulate in f32.
        rx = jnp.maximum(x_ref[...], 0).astype(jnp.float32)
        ry = jnp.maximum(y_ref[...], 0).astype(jnp.float32)
        d = rx - ry

        def accumulate(dd):
            sq = dd * dd
            # (block_rows,128) -> (n_vregs,8,128) is a layout-free split of the
            # sublane axis; sum(axis=0) is pure elementwise vreg adds (VPU),
            # so only one (8,128) vreg is read-modified-written per step.
            acc_ref[...] += sq.reshape(n_vregs, SUBLANE, LANE).sum(axis=0)

        if need_mask:
            step = c * blocks_per_chunk + i
            step_is_partial = (step + 1) * block_rows > total_rows

            @pl.when(jnp.logical_not(step_is_partial))
            def _():
                accumulate(d)                  # hot path: no mask ops

            @pl.when(step_is_partial)
            def _():
                # Mask the DIFF (not the square) so garbage/Inf/NaN in the
                # padded trailing block (or a clamped phantom step) never
                # reaches the accumulator.
                row_ids = (lax.broadcasted_iota(jnp.int32, d.shape, 0)
                           + step * block_rows)
                accumulate(jnp.where(row_ids < total_rows, d, 0.0))
        else:
            accumulate(d)

        @pl.when(i == pl.num_programs(1) - 1)
        def _():
            out_ref[0, 0] = jnp.sum(acc_ref[...])   # one cross-lane reduce

    return kernel


def _relu_sqdiff_sum_2d(x2d, y2d):
    """sum((relu(x) - relu(y))**2) over a (rows, 128) slab via Pallas."""
    rows = x2d.shape[0]
    itemsize = jnp.dtype(x2d.dtype).itemsize
    row_bytes = LANE * itemsize

    target_rows = max(SUBLANE_ALIGN,
                      (_block_bytes_target() // row_bytes)
                      // SUBLANE_ALIGN * SUBLANE_ALIGN)
    block_rows = min(target_rows, _round_up(rows, SUBLANE_ALIGN))
    num_blocks = pl.cdiv(rows, block_rows)

    # Split rows across 2 chunks (feeds both v7x TensorCores; measured no-op
    # cost on single-TC parts) only when it wastes no HBM: even block count,
    # or enough blocks that one phantom re-read is <2% of traffic.
    if num_blocks >= 2 and (num_blocks % 2 == 0 or num_blocks >= 64):
        num_chunks = 2
    else:
        num_chunks = 1
    blocks_per_chunk = pl.cdiv(num_blocks, num_chunks)
    covered_rows = num_chunks * blocks_per_chunk * block_rows
    need_mask = covered_rows != rows

    if num_chunks * blocks_per_chunk != num_blocks:
        # Odd block count with 2 chunks: one phantom step; clamp its block
        # index (its duplicated data is fully zeroed by the in-kernel mask).
        def in_map(c, i):
            return (jnp.minimum(c * blocks_per_chunk + i, num_blocks - 1), 0)
    else:
        def in_map(c, i):
            return (c * blocks_per_chunk + i, 0)

    kernel = _make_kernel(block_rows, blocks_per_chunk, rows, need_mask)

    block_bytes = block_rows * row_bytes
    # 2 inputs x 2 pipeline buffers + small scratch/compiler headroom.
    vmem_limit = 4 * block_bytes + (8 << 20)

    partial = pl.pallas_call(
        kernel,
        out_shape=jax.ShapeDtypeStruct((num_chunks, 1), jnp.float32),
        grid=(num_chunks, blocks_per_chunk),
        in_specs=[
            pl.BlockSpec((block_rows, LANE), in_map),
            pl.BlockSpec((block_rows, LANE), in_map),
        ],
        out_specs=pl.BlockSpec((1, 1), lambda c, i: (c, 0),
                               memory_space=pltpu.SMEM),
        scratch_shapes=[pltpu.VMEM((SUBLANE, LANE), jnp.float32)],
        compiler_params=pltpu.CompilerParams(
            dimension_semantics=("parallel", "arbitrary"),
            vmem_limit_bytes=vmem_limit),
    )(x2d, y2d)
    return jnp.sum(partial)


def perceptual_loss(output, target):
    """JAX/Pallas equivalent of PerceptualLoss(layers=[3, 8, 15]).forward."""
    assert output.shape == target.shape
    n_elem = output.size  # static Python int

    # Keep bf16 inputs in bf16 (halves HBM traffic); upcast inside the kernel.
    if output.dtype not in (jnp.float32, jnp.bfloat16):
        output = output.astype(jnp.float32)
    if target.dtype != output.dtype:
        target = target.astype(output.dtype)

    x = output.reshape(-1)
    y = target.reshape(-1)

    n_main = (n_elem // LANE) * LANE
    total = jnp.float32(0.0)
    if n_main:
        rows = n_main // LANE
        total = total + _relu_sqdiff_sum_2d(x[:n_main].reshape(rows, LANE),
                                            y[:n_main].reshape(rows, LANE))
    if n_main != n_elem:
        # Tiny (< 128 element) unaligned tail: one-liner XLA reduction.
        xt = jnp.maximum(x[n_main:].astype(jnp.float32), 0.0)
        yt = jnp.maximum(y[n_main:].astype(jnp.float32), 0.0)
        total = total + jnp.sum((xt - yt) ** 2)

    mse = total / jnp.float32(n_elem)
    # The three "layers" [3, 8, 15] are ReLUs (idempotent), so all three MSE
    # terms are identical: loss = mse_1 + mse_2 + mse_3 = 3 * mse.
    return mse + mse + mse


def _reference(output, target):
    rx = jnp.maximum(output.astype(jnp.float32), 0.0)
    ry = jnp.maximum(target.astype(jnp.float32), 0.0)
    m = jnp.mean((rx - ry) ** 2)
    return m + m + m


if __name__ == "__main__":
    key = jax.random.PRNGKey(0)
    k1, k2, k3, k4 = jax.random.split(key, 4)

    # VGG-style NCHW inputs: batch=2, channels=3, spatial=16x16.
    out_img = jax.random.normal(k1, (2, 3, 16, 16), dtype=jnp.float32)
    tgt_img = jax.random.normal(k2, (2, 3, 16, 16), dtype=jnp.float32)
    loss = jax.block_until_ready(perceptual_loss(out_img, tgt_img))
    ref = jax.block_until_ready(_reference(out_img, tgt_img))
    assert jnp.allclose(loss, ref, rtol=1e-4, atol=1e-6), (loss, ref)

    # Unaligned shape: exercises the in-kernel gated row mask + lane-tail path.
    out2 = jax.random.normal(k3, (2, 3, 17, 17), dtype=jnp.float32)
    tgt2 = jax.random.normal(k4, (2, 3, 17, 17), dtype=jnp.float32)
    loss2 = jax.block_until_ready(perceptual_loss(out2, tgt2))
    ref2 = jax.block_until_ready(_reference(out2, tgt2))
    assert jnp.allclose(loss2, ref2, rtol=1e-4, atol=1e-6), (loss2, ref2)

    # bf16 inputs: exercises the relu-in-bf16-before-upcast path.
    out3 = out_img.astype(jnp.bfloat16)
    tgt3 = tgt_img.astype(jnp.bfloat16)
    loss3 = jax.block_until_ready(perceptual_loss(out3, tgt3))
    ref3 = jax.block_until_ready(_reference(out3, tgt3))
    assert jnp.allclose(loss3, ref3, rtol=1e-3, atol=1e-5), (loss3, ref3)

    print("KERNEL_OK")
</pallas_src>

<mosaic_0001>
module attributes {stable_mosaic.version = 11 : i64} {
  func.func @kernel(%arg0: i32, %arg1: i32, %arg2: memref<16x128xf32, #tpu.memory_space<vmem>>, %arg3: memref<16x128xf32, #tpu.memory_space<vmem>>, %arg4: memref<1x1xf32, #tpu.memory_space<smem>>, %arg5: memref<8x128xf32, #tpu.memory_space<vmem>>) attributes {dimension_semantics = [#tpu.dimension_semantics<parallel>, #tpu.dimension_semantics<arbitrary>], iteration_bounds = array<i64: 1, 1>, scalar_prefetch = 0 : i64, scratch_operands = 1 : i64, tpu.core_type = #tpu.core_type<tc>, window_params = [{transform_indices = @transform_0, window_bounds = array<i64: 16, 128>}, {transform_indices = @transform_1, window_bounds = array<i64: 16, 128>}, {transform_indices = @transform_2, window_bounds = array<i64: 1, 1>}]} {
    %c0_i32 = arith.constant 0 : i32
    %0 = arith.cmpi eq, %arg1, %c0_i32 : i32
    %1 = arith.extui %0 : i1 to i32
    %c0_i32_0 = arith.constant 0 : i32
    %2 = arith.cmpi ne, %1, %c0_i32_0 : i32
    scf.if %2 {
      %cst_10 = arith.constant 0.000000e+00 : f32
      %23 = vector.broadcast %cst_10 : f32 to vector<8x128xf32>
      %c0_11 = arith.constant 0 : index
      %c0_12 = arith.constant 0 : index
      %24 = vector.load %arg5[%c0_11, %c0_12] : memref<8x128xf32, #tpu.memory_space<vmem>>, vector<8x128xf32>
      tpu.vector_store %arg5[%c0_11, %c0_12], %23 {strides = array<i32>} : memref<8x128xf32, #tpu.memory_space<vmem>>, vector<8x128xf32>,
    } else {
    }
    %c0 = arith.constant 0 : index
    %c0_1 = arith.constant 0 : index
    %3 = vector.load %arg2[%c0, %c0_1] : memref<16x128xf32, #tpu.memory_space<vmem>>, vector<16x128xf32>
    %cst = arith.constant 0.000000e+00 : f32
    %4 = vector.broadcast %cst : f32 to vector<16x128xf32>
    %5 = arith.maximumf %3, %4 : vector<16x128xf32>
    %c0_2 = arith.constant 0 : index
    %c0_3 = arith.constant 0 : index
    %6 = vector.load %arg3[%c0_2, %c0_3] : memref<16x128xf32, #tpu.memory_space<vmem>>, vector<16x128xf32>
    %cst_4 = arith.constant 0.000000e+00 : f32
    %7 = vector.broadcast %cst_4 : f32 to vector<16x128xf32>
    %8 = arith.maximumf %6, %7 : vector<16x128xf32>
    %9 = arith.subf %5, %8 : vector<16x128xf32>
    %c1_i32 = arith.constant 1 : i32
    %10 = arith.muli %arg0, %c1_i32 : i32
    %11 = arith.addi %10, %arg1 : i32
    %c1_i32_5 = arith.constant 1 : i32
    %12 = arith.addi %11, %c1_i32_5 : i32
    %c16_i32 = arith.constant 16 : i32
    %13 = arith.muli %12, %c16_i32 : i32
    %c12_i32 = arith.constant 12 : i32
    %14 = arith.cmpi sgt, %13, %c12_i32 : i32
    %true = arith.constant true
    %15 = arith.xori %14, %true : i1
    %16 = arith.extui %15 : i1 to i32
    %c0_i32_6 = arith.constant 0 : i32
    %17 = arith.cmpi ne, %16, %c0_i32_6 : i32
    scf.if %17 {
      %23 = arith.mulf %9, %9 : vector<16x128xf32>
      %c0_10 = arith.constant 0 : index
      %c0_11 = arith.constant 0 : index
      %24 = vector.load %arg5[%c0_10, %c0_11] : memref<8x128xf32, #tpu.memory_space<vmem>>, vector<8x128xf32>
      %25 = vector.shape_cast %23 : vector<16x128xf32> to vector<2x8x128xf32>
      %cst_12 = arith.constant dense<0.000000e+00> : vector<8x128xf32>
      %26 = vector.multi_reduction <add>, %25, %cst_12 [0] : vector<2x8x128xf32> to vector<8x128xf32>
      %27 = arith.addf %24, %26 : vector<8x128xf32>
      %c0_13 = arith.constant 0 : index
      %c0_14 = arith.constant 0 : index
      %28 = vector.load %arg5[%c0_13, %c0_14] : memref<8x128xf32, #tpu.memory_space<vmem>>, vector<8x128xf32>
      tpu.vector_store %arg5[%c0_13, %c0_14], %27 {strides = array<i32>} : memref<8x128xf32, #tpu.memory_space<vmem>>, vector<8x128xf32>,
    } else {
    }
    %18 = arith.extui %14 : i1 to i32
    %c0_i32_7 = arith.constant 0 : i32
    %19 = arith.cmpi ne, %18, %c0_i32_7 : i32
    scf.if %19 {
      %23 = tpu.iota {dimensions = array<i32: 0>} : vector<16x128xi32>
      %c16_i32_10 = arith.constant 16 : i32
      %24 = arith.muli %11, %c16_i32_10 : i32
      %25 = vector.broadcast %24 : i32 to vector<16x128xi32>
      %26 = arith.addi %23, %25 : vector<16x128xi32>
      %c12_i32_11 = arith.constant 12 : i32
      %27 = vector.broadcast %c12_i32_11 : i32 to vector<16x128xi32>
      %28 = arith.cmpi slt, %26, %27 : vector<16x128xi32>
      %cst_12 = arith.constant 0.000000e+00 : f32
      %29 = vector.broadcast %cst_12 : f32 to vector<16x128xf32>
      %30 = arith.select %28, %9, %29 : vector<16x128xi1>, vector<16x128xf32>
      %31 = arith.mulf %30, %30 : vector<16x128xf32>
      %c0_13 = arith.constant 0 : index
      %c0_14 = arith.constant 0 : index
      %32 = vector.load %arg5[%c0_13, %c0_14] : memref<8x128xf32, #tpu.memory_space<vmem>>, vector<8x128xf32>
      %33 = vector.shape_cast %31 : vector<16x128xf32> to vector<2x8x128xf32>
      %cst_15 = arith.constant dense<0.000000e+00> : vector<8x128xf32>
      %34 = vector.multi_reduction <add>, %33, %cst_15 [0] : vector<2x8x128xf32> to vector<8x128xf32>
      %35 = arith.addf %32, %34 : vector<8x128xf32>
      %c0_16 = arith.constant 0 : index
      %c0_17 = arith.constant 0 : index
      %36 = vector.load %arg5[%c0_16, %c0_17] : memref<8x128xf32, #tpu.memory_space<vmem>>, vector<8x128xf32>
      tpu.vector_store %arg5[%c0_16, %c0_17], %35 {strides = array<i32>} : memref<8x128xf32, #tpu.memory_space<vmem>>, vector<8x128xf32>,
    } else {
    }
    %c0_i32_8 = arith.constant 0 : i32
    %20 = arith.cmpi eq, %arg1, %c0_i32_8 : i32
    %21 = arith.extui %20 : i1 to i32
    %c0_i32_9 = arith.constant 0 : i32
    %22 = arith.cmpi ne, %21, %c0_i32_9 : i32
    scf.if %22 {
      %c0_10 = arith.constant 0 : index
      %c0_11 = arith.constant 0 : index
      %23 = vector.load %arg5[%c0_10, %c0_11] : memref<8x128xf32, #tpu.memory_space<vmem>>, vector<8x128xf32>
      %24 = vector.shape_cast %23 : vector<8x128xf32> to vector<1x8x128xf32>
      %cst_12 = arith.constant dense<0.000000e+00> : vector<1xf32>
      %25 = vector.multi_reduction <add>, %24, %cst_12 [1, 2] : vector<1x8x128xf32> to vector<1xf32>
      %26 = vector.shape_cast %25 : vector<1xf32> to vector<1x1x1xf32>
      %27 = vector.extract %26[0, 0, 0] : f32 from vector<1x1x1xf32>
      %c0_13 = arith.constant 0 : index
      %c0_14 = arith.constant 0 : index
      %28 = memref.load %arg4[%c0_13, %c0_14] : memref<1x1xf32, #tpu.memory_space<smem>>
      memref.store %27, %arg4[%c0_13, %c0_14] : memref<1x1xf32, #tpu.memory_space<smem>>
    } else {
    }
    return
  }
  func.func @transform_0(%arg0: i32, %arg1: i32) -> (i32, i32) {
    %c1_i32 = arith.constant 1 : i32
    %0 = arith.muli %arg0, %c1_i32 : i32
    %1 = arith.addi %0, %arg1 : i32
    %c0_i32 = arith.constant 0 : i32
    %c0_i32_0 = arith.constant 0 : i32
    return %1, %c0_i32 : i32, i32
  }
  func.func @transform_1(%arg0: i32, %arg1: i32) -> (i32, i32) {
    %c1_i32 = arith.constant 1 : i32
    %0 = arith.muli %arg0, %c1_i32 : i32
    %1 = arith.addi %0, %arg1 : i32
    %c0_i32 = arith.constant 0 : i32
    %c0_i32_0 = arith.constant 0 : i32
    return %1, %c0_i32 : i32, i32
  }
  func.func @transform_2(%arg0: i32, %arg1: i32) -> (i32, i32) {
    %c0_i32 = arith.constant 0 : i32
    %c0_i32_0 = arith.constant 0 : i32
    return %arg0, %c0_i32 : i32, i32
  }
}

</mosaic_0001>

<bundles_post_ra>
// kernel: tpu_custom_call.1
= control target key start
LH: loop header
LB: loop body
LE: loop exit
PB: predicated region body
PF: predicated region fallthrough
CT: control target
= control target key end

     0   :  { %7 = vsyncpa [#allocation4], 0  ;;  %s221_s0 = inlined_call_operand.hbm [shape: f32[12,128], index: 0, kind: input, shape index: {}]   ;;  %s222_s1 = inlined_call_operand.hbm [shape: f32[12,128], index: 1, kind: input, shape index: {}]   ;;  %s223_s2 = inlined_call_operand.hbm [shape: f32[1,1], index: 2, kind: output, shape index: {}]  }
   0x1   :  { %8 = vsyncpa [#allocation7], 0 }
   0x2   :  { %9 = vsyncpa [#allocation5], 0  ;;  %s192_s9 = smov [#allocation3]  }
   0x3   :  { %s19_s10 = sshll.u32 %s192_s9, 4  ;;  %s20_s10 = int_to_ptr.vmem [resolvable:$true] %s19_s10 }
   0x4   :  { %s146_s11 = scalar_lea.vmem %s20_s10, 256  ;;  %p151_p1 = scmp.lt.s32.totalorder %s20_s10, %s20_s10 }
   0x5   :  { %p147_p0 = scmp.ne.s32.totalorder %s20_s10, %s146_s11  ;;  %p152_p2 = scmp.lt.s32.totalorder %s146_s11, %s146_s11 }
   0x7   :  { %p153_p3 = por %p152_p2, %p151_p1 }
   0x9   :  { %p154_p4 = pnand %p153_p3, %p147_p0 }
   0xb   :  { %157 = shalt.err (!%p154_p4)
}
   0xc   :  { %s193_s12 = smov 128   ;;  %s194_s13 = smov 8  }
   0xd   :  { %25 = dma.hbm_to_vmem [thread:$0]  %s221_s0, 256, %s20_s10, [#allocation4], %s193_s12, %s193_s12, %s194_s13  }
   0xe   :  { %s195_s16 = smov [#allocation6]  }
   0xf   :  { %s35_s17 = sshll.u32 %s195_s16, 4  ;;  %s36_s17 = int_to_ptr.vmem [resolvable:$true] %s35_s17 }
  0x10   :  { %s166_s18 = scalar_lea.vmem %s36_s17, 256  ;;  %p171_p6 = scmp.lt.s32.totalorder %s36_s17, %s36_s17 }
  0x11   :  { %p167_p5 = scmp.ne.s32.totalorder %s36_s17, %s166_s18  ;;  %p172_p7 = scmp.lt.s32.totalorder %s166_s18, %s166_s18 }
  0x13   :  { %p173_p8 = por %p172_p7, %p171_p6 }
  0x15   :  { %p174_p9 = pnand %p173_p8, %p167_p5 }
  0x17   :  { %177 = shalt.err (!%p174_p9)
}
  0x18   :  { %41 = dma.hbm_to_vmem [thread:$0]  %s222_s1, 256, %s36_s17, [#allocation7], %s193_s12, %s193_s12, %s194_s13  }
  0x19   :  { %186 = dma.done.wait [#allocation4], 256  }
  0x1a   :  { %187 = vsyncadd [#allocation4], 4294967040 }
  0x1b   :  { %188 = dma.done.wait [#allocation7], 256  }
  0x1c   :  { %189 = vsyncadd [#allocation7], 4294967040  ;;  %v84_v0 = vlaneseq  ;;  %v57_v3 = vld [vmem:[#allocation3] sm:$0xff]  ;;  %v58_v4 = vld [vmem:[#allocation3 + $0x8] sm:$0xff]  ;;  %s196_s1 = smov [#allocation8]  }
  0x1d   :  { %v61_v5 = vld [vmem:[#allocation6] sm:$0xff]  ;;  %v59_v6 = vmax.f32 %v57_v3, 0.0  ;;  %v60_v7 = vmax.f32 %v58_v4, 0.0  ;;  %v62_v8 = vld [vmem:[#allocation6 + $0x8] sm:$0xff] }
  0x1e   :  { %v85_v1 = vshrl.u32 %v84_v0, 7  ;;  %v63_v9 = vmax.f32 %v61_v5, 0.0  ;;  %v64_v10 = vmax.f32 %v62_v8, 0.0 }
  0x20   :  { %v86_v2 = vadd.s32 8, %v85_v1  ;;  %v65_v11 = vsub.f32 %v59_v6, %v63_v9  ;;  %v66_v12 = vsub.f32 %v60_v7, %v64_v10 }
  0x22   :  { %vm92_vm0 = vcmp.lt.s32.totalorder %v86_v2, 12  ;;  %v95_v13 = vmul.f32 %v65_v11, %v65_v11 }
  0x23   :  { %v94_v14 = vsel %vm92_vm0, %v66_v12, 0.0 }
  0x24   :  { %v96_v15 = vmul.f32 %v94_v14, %v94_v14 }
  0x26   :  { %v98_v16 = vadd.f32 %v96_v15, %v95_v13 }
  0x28   :  { %105 = vadd.xlane.f32.xlu0 %v98_v16 }
  0xb1   :  { %v106_v17 = vpop.xlane.xlu0 %105 }
  0xb2   :  { %v107_v18 = vrot.slane %v106_v17, 4 }
  0xb4   :  { %v108_v19 = vadd.f32 %v107_v18, %v106_v17 }
  0xb6   :  { %v109_v20 = vrot.slane %v108_v19, 2 }
  0xb8   :  { %v110_v21 = vadd.f32 %v109_v20, %v108_v19 }
  0xba   :  { %v111_v22 = vrot.slane %v110_v21, 1 }
  0xbc   :  { %v112_v23 = vadd.f32 %v111_v22, %v110_v21 }
  0xbe   :  { %131 = vpush %v112_v23 }
  0xef   :  { %s132_s0 = spop %131 }
  0xf0   :  { %115 = sst [smem:[#allocation8]] %s132_s0 }
  0xf1   :  { %123 = dma.smem_to_hbm %s196_s1, 16, %s223_s2, [#allocation5]  }
  0xf2   :  { %190 = dma.done.wait [#allocation5], 16  }
  0xf3   :  { %191 = vsyncadd [#allocation5], 4294967280 }
  0xf4   :  { %127 = sfence }
  0xf5   :  { %128 = vsyncpa [#allocation4], 1 }
  0xf6   :  { %129 = vsyncpa [#allocation7], 1 }
  0xf7   :  { %130 = vsyncpa [#allocation5], 1 }

</bundles_post_ra>
